<compile_context>
chip_gen: v5e
topology: v5e:2x2
jax: 0.10.0
libtpu: 0.0.40
codegen_flags: <defaults>
</compile_context>

<pallas_src>
import functools
import math

import jax
import jax.numpy as jnp
from jax.experimental import pallas as pl
from jax.experimental.pallas import tpu as pltpu

MODAL_ORDER = ("video", "audio", "text")   # fixed iteration order (mirrors the dict order)
_HIGHEST = jax.lax.Precision.HIGHEST
_INV_SQRT2 = 1.0 / math.sqrt(2.0)


def _cdiv(a, b):
    return (a + b - 1) // b


def _round_up(x, m):
    return ((x + m - 1) // m) * m


def _erf_poly(z):
    """Abramowitz & Stegun 7.1.26 erf approximation, |err| <= 1.5e-7 (exp -> EUP)."""
    az = jnp.abs(z)
    t = 1.0 / (1.0 + 0.3275911 * az)
    poly = t * (0.254829592
                + t * (-0.284496736
                       + t * (1.421413741
                              + t * (-1.453152027 + t * 1.061405429))))
    e = 1.0 - poly * jnp.exp(-az * az)
    return jnp.where(z >= 0.0, e, -e)


def _gelu_exact(x):
    # PyTorch nn.GELU() default = exact erf formulation.
    return 0.5 * x * (1.0 + _erf_poly(x * _INV_SQRT2))


def multimodal_fusion_kernel(
    x_ref,       # [TILE_B, d_total]  concatenated modal features (batch tile)
    wcomb_ref,   # [d_total, D_pad]   folded weight  vstack_m(w_m * W_m^T) @ W_fuse^T  (zero pad cols)
    vecs_ref,    # [3, D_pad]         rows: composed bias, ln_gamma, ln_beta (zero pad cols)
    out_ref,     # [TILE_B, D_pad]
    *,
    d_live,      # number of live output columns (= output_dim)
):
    vecs = vecs_ref[...]
    bias = vecs[0:1, :]
    gamma = vecs[1:2, :]
    beta = vecs[2:3, :]

    # --- single MXU matmul: 3 modal projections + softmax mix + fusion Linear, all folded ---
    h = jnp.dot(x_ref[...], wcomb_ref[...], preferred_element_type=jnp.float32) + bias

    # --- GELU (exact erf).  Pad columns: h == 0 -> GELU(0) == 0 exactly. ---
    g = _gelu_exact(h)

    # --- LayerNorm(eps=1e-5), one-pass stats over the d_live live columns.
    #     Pad columns contribute exactly 0 to both sums. ---
    s1 = jnp.sum(g, axis=-1, keepdims=True)
    s2 = jnp.sum(g * g, axis=-1, keepdims=True)
    inv_d = 1.0 / d_live
    mean = s1 * inv_d
    var = jnp.maximum(s2 * inv_d - mean * mean, 0.0)
    normed = (g - mean) * jax.lax.rsqrt(var + 1e-5)
    # Pad columns: gamma == beta == 0 -> output 0 there; sliced off in the wrapper.
    out_ref[...] = (normed * gamma + beta).astype(out_ref.dtype)


def multimodal_fusion(modal_features, params, output_dim, *,
                      max_tile_b=2048, matmul_dtype=jnp.float32):
    """modal_features: dict modal -> [B, d_m] f32.  params: dict of weights (see _init_params)."""
    xs = [modal_features[m] for m in MODAL_ORDER]
    dims = [x.shape[1] for x in xs]
    batch = xs[0].shape[0]
    d_total = sum(dims)
    D = output_dim
    D_pad = max(128, _round_up(D, 128))      # lane-dense output width

    # --- concatenated activations (the only per-call data) ---
    x_cat = jnp.concatenate(xs, axis=1)                                   # [B, d_total]

    # --- parameter-only folding (amortized under jit; linear-algebra identity:
    #     sum_m w_m (x_m @ W_m^T + b_m) @ W_fuse^T + b_fuse
    #       == x_cat @ [vstack_m(w_m W_m^T) @ W_fuse^T] + sum_m w_m (b_m@W_fuse^T) + b_fuse) ---
    w_soft = jax.nn.softmax(params["attn"])                               # [M]
    wf_t = params["W_fuse"].T                                             # [D, D]
    w_stack = jnp.concatenate(
        [w_soft[i] * params[f"W_{m}"].T for i, m in enumerate(MODAL_ORDER)], axis=0)  # [d_total, D]
    w_comb = jnp.dot(w_stack, wf_t, precision=_HIGHEST)                   # [d_total, D]
    bias = params["b_fuse"]
    for i, m in enumerate(MODAL_ORDER):
        bias = bias + w_soft[i] * jnp.dot(params[f"b_{m}"], wf_t, precision=_HIGHEST)  # [D]

    # pad to lane-dense width (zero columns -> exact zeros through GELU/LN epilogue)
    pad = D_pad - D
    w_comb = jnp.pad(w_comb, ((0, 0), (0, pad)))
    vecs = jnp.stack([jnp.pad(bias, (0, pad)),
                      jnp.pad(params["ln_gamma"], (0, pad)),
                      jnp.pad(params["ln_beta"], (0, pad))], axis=0)      # [3, D_pad]

    # --- batch tiling: big tiles, >=2-step "parallel" grid for large batches (v7x megacore) ---
    row_align = 16 if matmul_dtype == jnp.bfloat16 else 8
    num_tiles = _cdiv(batch, max_tile_b)
    if batch >= 256:
        num_tiles = max(num_tiles, 2)        # give v7x's two TensorCores something to split
    tile_b = _round_up(_cdiv(batch, num_tiles), row_align)
    num_tiles = _cdiv(batch, tile_b)
    b_pad = tile_b * num_tiles
    if b_pad != batch:
        x_cat = jnp.pad(x_cat, ((0, b_pad - batch), (0, 0)))

    if matmul_dtype != jnp.float32:
        # v5e/v6e option: halve the dominant streamed bytes; accumulation stays f32.
        x_cat = x_cat.astype(matmul_dtype)
        w_comb = w_comb.astype(matmul_dtype)

    elt_in = jnp.dtype(x_cat.dtype).itemsize
    # Double-buffered activations + (constant-index, still double-buffered) parameters.
    # NOTE: at production-scale d_total x D, mark wcomb/vecs with pipeline_mode=pl.Buffered(1)
    # to halve the parameter VMEM footprint (matters on v7x's 64 MiB VMEM).
    vmem_est = (2 * tile_b * d_total * elt_in
                + 2 * tile_b * D_pad * 4
                + 2 * d_total * D_pad * elt_in
                + 2 * 3 * D_pad * 4)
    vmem_limit = int(min(max(2 * vmem_est, 16 * 1024 * 1024), 64 * 1024 * 1024))

    cost = pl.CostEstimate(
        flops=2 * b_pad * d_total * D_pad,
        transcendentals=b_pad * D_pad,                      # one exp per output element (GELU)
        bytes_accessed=(b_pad * d_total * elt_in
                        + d_total * D_pad * elt_in
                        + 3 * D_pad * 4
                        + b_pad * D_pad * 4),
    )

    kernel = functools.partial(multimodal_fusion_kernel, d_live=D)

    out = pl.pallas_call(
        kernel,
        out_shape=jax.ShapeDtypeStruct((b_pad, D_pad), jnp.float32),
        grid_spec=pltpu.PrefetchScalarGridSpec(
            num_scalar_prefetch=0,
            grid=(num_tiles,),
            in_specs=[
                pl.BlockSpec((tile_b, d_total), lambda i: (i, 0)),   # activations (batch-tiled)
                pl.BlockSpec((d_total, D_pad), lambda i: (0, 0)),    # folded weight (grid-invariant)
                pl.BlockSpec((3, D_pad), lambda i: (0, 0)),          # bias / gamma / beta
            ],
            out_specs=pl.BlockSpec((tile_b, D_pad), lambda i: (i, 0)),
        ),
        compiler_params=pltpu.CompilerParams(
            dimension_semantics=("parallel",),
            vmem_limit_bytes=vmem_limit,
        ),
        cost_estimate=cost,
    )(x_cat, w_comb, vecs)
    return out[:batch, :D]


def _init_params(key, modal_dims, output_dim):
    """Deterministic init mimicking nn.Linear defaults (uniform +/- 1/sqrt(fan_in))."""
    params = {}
    for m in MODAL_ORDER:
        d = modal_dims[m]
        key, k1, k2 = jax.random.split(key, 3)
        bound = 1.0 / math.sqrt(d)
        params[f"W_{m}"] = jax.random.uniform(k1, (output_dim, d), jnp.float32, -bound, bound)
        params[f"b_{m}"] = jax.random.uniform(k2, (output_dim,), jnp.float32, -bound, bound)
    key, k1, k2 = jax.random.split(key, 3)
    bound = 1.0 / math.sqrt(output_dim)
    params["W_fuse"] = jax.random.uniform(k1, (output_dim, output_dim), jnp.float32, -bound, bound)
    params["b_fuse"] = jax.random.uniform(k2, (output_dim,), jnp.float32, -bound, bound)
    params["attn"] = jnp.ones((len(MODAL_ORDER),), jnp.float32) / len(MODAL_ORDER)
    params["ln_gamma"] = jnp.ones((output_dim,), jnp.float32)
    params["ln_beta"] = jnp.zeros((output_dim,), jnp.float32)
    return params


def _reference(modal_features, params):
    """Unfused reference matching the PyTorch module exactly (full-f32 matmuls)."""
    projs = []
    for m in MODAL_ORDER:
        projs.append(jnp.dot(modal_features[m], params[f"W_{m}"].T, precision=_HIGHEST)
                     + params[f"b_{m}"])
    stacked = jnp.stack(projs, axis=1)                        # [B, M, D]
    w = jax.nn.softmax(params["attn"], axis=0)
    fused = jnp.sum(stacked * w.reshape(1, -1, 1), axis=1)    # [B, D]
    h = jnp.dot(fused, params["W_fuse"].T, precision=_HIGHEST) + params["b_fuse"]
    g = jax.nn.gelu(h, approximate=False)
    mean = jnp.mean(g, axis=-1, keepdims=True)
    var = jnp.mean((g - mean) ** 2, axis=-1, keepdims=True)
    return (g - mean) * jax.lax.rsqrt(var + 1e-5) * params["ln_gamma"] + params["ln_beta"]


if __name__ == "__main__":
    modal_dims = {"video": 16, "audio": 12, "text": 24}
    output_dim = 32
    batch = 8

    key = jax.random.PRNGKey(0)
    key, kp = jax.random.split(key)
    params = _init_params(kp, modal_dims, output_dim)
    # Non-uniform attention logits so the hoisted softmax fold is actually exercised.
    params["attn"] = jnp.array([0.7, -0.2, 0.4], jnp.float32)

    modal_features = {}
    for m in MODAL_ORDER:
        key, kx = jax.random.split(key)
        modal_features[m] = jax.random.normal(kx, (batch, modal_dims[m]), jnp.float32)

    out = multimodal_fusion(modal_features, params, output_dim)
    out = jax.block_until_ready(out)

    ref = _reference(modal_features, params)
    assert out.shape == (batch, output_dim)
    # f32 matmul operands + f32 accumulation; only reassociation / erf-poly noise expected.
    assert jnp.allclose(out, ref, atol=2e-4, rtol=2e-4), "mismatch vs reference"

    print("KERNEL_OK")
</pallas_src>

<mosaic_0001>
module attributes {stable_mosaic.version = 11 : i64} {
  func.func @multimodal_fusion_kernel(%arg0: i32, %arg1: memref<8x52xf32, #tpu.memory_space<vmem>>, %arg2: memref<52x128xf32, #tpu.memory_space<vmem>>, %arg3: memref<3x128xf32, #tpu.memory_space<vmem>>, %arg4: memref<8x128xf32, #tpu.memory_space<vmem>>) attributes {dimension_semantics = [#tpu.dimension_semantics<parallel>], iteration_bounds = array<i64: 1>, scalar_prefetch = 0 : i64, scratch_operands = 0 : i64, tpu.core_type = #tpu.core_type<tc>, window_params = [{transform_indices = @transform_0, window_bounds = array<i64: 8, 52>}, {pipeline_mode = #tpu.pipeline_mode<synchronous>, transform_indices = @transform_1, window_bounds = array<i64: 52, 128>}, {pipeline_mode = #tpu.pipeline_mode<synchronous>, transform_indices = @transform_2, window_bounds = array<i64: 3, 128>}, {transform_indices = @transform_3, window_bounds = array<i64: 8, 128>}]} {
    %c0 = arith.constant 0 : index
    %c0_0 = arith.constant 0 : index
    %0 = vector.load %arg3[%c0, %c0_0] : memref<3x128xf32, #tpu.memory_space<vmem>>, vector<3x128xf32>
    %1 = vector.extract_strided_slice %0 {offsets = [0, 0], sizes = [1, 128], strides = [1, 1]} : vector<3x128xf32> to vector<1x128xf32>
    %2 = vector.extract_strided_slice %0 {offsets = [1, 0], sizes = [1, 128], strides = [1, 1]} : vector<3x128xf32> to vector<1x128xf32>
    %3 = vector.extract_strided_slice %0 {offsets = [2, 0], sizes = [1, 128], strides = [1, 1]} : vector<3x128xf32> to vector<1x128xf32>
    %c0_1 = arith.constant 0 : index
    %c0_2 = arith.constant 0 : index
    %4 = vector.load %arg1[%c0_1, %c0_2] : memref<8x52xf32, #tpu.memory_space<vmem>>, vector<8x52xf32>
    %c0_3 = arith.constant 0 : index
    %c0_4 = arith.constant 0 : index
    %5 = vector.load %arg2[%c0_3, %c0_4] : memref<52x128xf32, #tpu.memory_space<vmem>>, vector<52x128xf32>
    %cst = arith.constant dense<0.000000e+00> : vector<8x128xf32>
    %6 = tpu.matmul %4, %5, %cst {dimension_numbers = #tpu.dot_dimension_numbers<[1], [0], [0], [1], [0, 0, 1, 1], [], []>} : vector<8x52xf32>, vector<52x128xf32>, vector<8x128xf32> -> vector<8x128xf32>
    %7 = vector.broadcast %1 : vector<1x128xf32> to vector<8x128xf32>
    %8 = arith.addf %6, %7 : vector<8x128xf32>
    %cst_5 = arith.constant 5.000000e-01 : f32
    %9 = vector.broadcast %cst_5 : f32 to vector<8x128xf32>
    %10 = arith.mulf %9, %8 : vector<8x128xf32>
    %cst_6 = arith.constant 0.707106769 : f32
    %11 = vector.broadcast %cst_6 : f32 to vector<8x128xf32>
    %12 = arith.mulf %8, %11 : vector<8x128xf32>
    %13 = math.absf %12 : vector<8x128xf32>
    %cst_7 = arith.constant 0.327591091 : f32
    %14 = vector.broadcast %cst_7 : f32 to vector<8x128xf32>
    %15 = arith.mulf %14, %13 : vector<8x128xf32>
    %cst_8 = arith.constant 1.000000e+00 : f32
    %16 = vector.broadcast %cst_8 : f32 to vector<8x128xf32>
    %17 = arith.addf %16, %15 : vector<8x128xf32>
    %cst_9 = arith.constant 1.000000e+00 : f32
    %18 = vector.broadcast %cst_9 : f32 to vector<8x128xf32>
    %19 = arith.divf %18, %17 : vector<8x128xf32>
    %cst_10 = arith.constant 1.06140542 : f32
    %20 = vector.broadcast %cst_10 : f32 to vector<8x128xf32>
    %21 = arith.mulf %19, %20 : vector<8x128xf32>
    %cst_11 = arith.constant -1.45315206 : f32
    %22 = vector.broadcast %cst_11 : f32 to vector<8x128xf32>
    %23 = arith.addf %22, %21 : vector<8x128xf32>
    %24 = arith.mulf %19, %23 : vector<8x128xf32>
    %cst_12 = arith.constant 1.42141378 : f32
    %25 = vector.broadcast %cst_12 : f32 to vector<8x128xf32>
    %26 = arith.addf %25, %24 : vector<8x128xf32>
    %27 = arith.mulf %19, %26 : vector<8x128xf32>
    %cst_13 = arith.constant -0.284496725 : f32
    %28 = vector.broadcast %cst_13 : f32 to vector<8x128xf32>
    %29 = arith.addf %28, %27 : vector<8x128xf32>
    %30 = arith.mulf %19, %29 : vector<8x128xf32>
    %cst_14 = arith.constant 0.254829586 : f32
    %31 = vector.broadcast %cst_14 : f32 to vector<8x128xf32>
    %32 = arith.addf %31, %30 : vector<8x128xf32>
    %33 = arith.mulf %19, %32 : vector<8x128xf32>
    %cst_15 = arith.constant 0.000000e+00 : f32
    %34 = vector.broadcast %cst_15 : f32 to vector<8x128xf32>
    %35 = arith.subf %34, %13 : vector<8x128xf32>
    %36 = arith.mulf %35, %13 : vector<8x128xf32>
    %37 = math.exp %36 : vector<8x128xf32>
    %38 = arith.mulf %33, %37 : vector<8x128xf32>
    %cst_16 = arith.constant 1.000000e+00 : f32
    %39 = vector.broadcast %cst_16 : f32 to vector<8x128xf32>
    %40 = arith.subf %39, %38 : vector<8x128xf32>
    %cst_17 = arith.constant 0.000000e+00 : f32
    %41 = vector.broadcast %cst_17 : f32 to vector<8x128xf32>
    %42 = arith.cmpf oge, %12, %41 : vector<8x128xf32>
    %cst_18 = arith.constant 0.000000e+00 : f32
    %43 = vector.broadcast %cst_18 : f32 to vector<8x128xf32>
    %44 = arith.subf %43, %40 : vector<8x128xf32>
    %45 = arith.select %42, %40, %44 : vector<8x128xi1>, vector<8x128xf32>
    %cst_19 = arith.constant 1.000000e+00 : f32
    %46 = vector.broadcast %cst_19 : f32 to vector<8x128xf32>
    %47 = arith.addf %46, %45 : vector<8x128xf32>
    %48 = arith.mulf %10, %47 : vector<8x128xf32>
    %cst_20 = arith.constant dense<0.000000e+00> : vector<8xf32>
    %49 = vector.multi_reduction <add>, %48, %cst_20 [1] : vector<8x128xf32> to vector<8xf32>
    %50 = vector.shape_cast %49 : vector<8xf32> to vector<8x1xf32>
    %51 = arith.mulf %48, %48 : vector<8x128xf32>
    %cst_21 = arith.constant dense<0.000000e+00> : vector<8xf32>
    %52 = vector.multi_reduction <add>, %51, %cst_21 [1] : vector<8x128xf32> to vector<8xf32>
    %53 = vector.shape_cast %52 : vector<8xf32> to vector<8x1xf32>
    %cst_22 = arith.constant 3.125000e-02 : f32
    %54 = vector.broadcast %cst_22 : f32 to vector<8x1xf32>
    %55 = arith.mulf %50, %54 : vector<8x1xf32>
    %cst_23 = arith.constant 3.125000e-02 : f32
    %56 = vector.broadcast %cst_23 : f32 to vector<8x1xf32>
    %57 = arith.mulf %53, %56 : vector<8x1xf32>
    %58 = arith.mulf %55, %55 : vector<8x1xf32>
    %59 = arith.subf %57, %58 : vector<8x1xf32>
    %cst_24 = arith.constant 0.000000e+00 : f32
    %60 = vector.broadcast %cst_24 : f32 to vector<8x1xf32>
    %61 = arith.maximumf %59, %60 : vector<8x1xf32>
    %62 = vector.broadcast %55 : vector<8x1xf32> to vector<8x128xf32>
    %63 = arith.subf %48, %62 : vector<8x128xf32>
    %cst_25 = arith.constant 9.99999974E-6 : f32
    %64 = vector.broadcast %cst_25 : f32 to vector<8x1xf32>
    %65 = arith.addf %61, %64 : vector<8x1xf32>
    %66 = math.rsqrt %65 : vector<8x1xf32>
    %67 = vector.broadcast %66 : vector<8x1xf32> to vector<8x128xf32>
    %68 = arith.mulf %63, %67 : vector<8x128xf32>
    %69 = vector.broadcast %2 : vector<1x128xf32> to vector<8x128xf32>
    %70 = arith.mulf %68, %69 : vector<8x128xf32>
    %71 = vector.broadcast %3 : vector<1x128xf32> to vector<8x128xf32>
    %72 = arith.addf %70, %71 : vector<8x128xf32>
    %c0_26 = arith.constant 0 : index
    %c0_27 = arith.constant 0 : index
    %73 = vector.load %arg4[%c0_26, %c0_27] : memref<8x128xf32, #tpu.memory_space<vmem>>, vector<8x128xf32>
    tpu.vector_store %arg4[%c0_26, %c0_27], %72 {strides = array<i32>} : memref<8x128xf32, #tpu.memory_space<vmem>>, vector<8x128xf32>,
    return
  }
  func.func @transform_0(%arg0: i32) -> (i32, i32) {
    %c0_i32 = arith.constant 0 : i32
    %c0_i32_0 = arith.constant 0 : i32
    return %arg0, %c0_i32 : i32, i32
  }
  func.func @transform_1(%arg0: i32) -> (i32, i32) {
    %c0_i32 = arith.constant 0 : i32
    %c0_i32_0 = arith.constant 0 : i32
    %c0_i32_1 = arith.constant 0 : i32
    return %c0_i32, %c0_i32_0 : i32, i32
  }
  func.func @transform_2(%arg0: i32) -> (i32, i32) {
    %c0_i32 = arith.constant 0 : i32
    %c0_i32_0 = arith.constant 0 : i32
    %c0_i32_1 = arith.constant 0 : i32
    return %c0_i32, %c0_i32_0 : i32, i32
  }
  func.func @transform_3(%arg0: i32) -> (i32, i32) {
    %c0_i32 = arith.constant 0 : i32
    %c0_i32_0 = arith.constant 0 : i32
    return %arg0, %c0_i32 : i32, i32
  }
}

</mosaic_0001>

<bundles_post_ra>
// kernel: tpu_custom_call.1
= control target key start
LH: loop header
LB: loop body
LE: loop exit
PB: predicated region body
PF: predicated region fallthrough
CT: control target
= control target key end

     0   :  { %8 = vsyncpa [#allocation3], 0  ;;  %s341_s0 = inlined_call_operand.hbm [shape: f32[8,52], index: 0, kind: input, shape index: {}]   ;;  %s342_s1 = inlined_call_operand.hbm [shape: f32[52,128], index: 1, kind: input, shape index: {}]   ;;  %s343_s2 = inlined_call_operand.hbm [shape: f32[3,128], index: 2, kind: input, shape index: {}]   ;;  %s344_s3 = inlined_call_operand.hbm [shape: f32[8,128], index: 3, kind: output, shape index: {}]  }
   0x1   :  { %9 = vsyncpa [#allocation6], 0  ;;  %s26_s14 = sshll.u32 %s342_s1, 4  ;;  %s27_s14 = int_to_ptr.hbm [resolvable:$true] %s26_s14 }
   0x2   :  { %10 = vsyncpa [#allocation4], 0  ;;  %s298_s15 = smov [#allocation5]   ;;  %s16_s19 = sshll.u32 %s341_s0, 4  ;;  %s17_s19 = int_to_ptr.hbm [resolvable:$true] %s16_s19 }
   0x3   :  { %s28_s16 = sshll.u32 %s298_s15, 4  ;;  %s299_s20 = smov 128   ;;  %s29_s16 = int_to_ptr.vmem [resolvable:$true] %s28_s16 }
   0x4   :  { %s300_s21 = smov 8   ;;  %s301_s22 = smov [#allocation2]  }
   0x5   :  { %34 = dma.hbm_to_vmem [thread:$0]  %s27_s14, 896, %s29_s16, [#allocation6], %s299_s20, %s299_s20, %s300_s21  }
   0x6   :  { %s18_s23 = sshll.u32 %s301_s22, 4  ;;  %s40_s26 = sshll.u32 %s343_s2, 4  ;;  %s19_s23 = int_to_ptr.vmem [resolvable:$true] %s18_s23  ;;  %s41_s26 = int_to_ptr.hbm [resolvable:$true] %s40_s26 }
   0x7   :  { %21 = dma.hbm_to_vmem [thread:$0]  %s17_s19, 128, %s19_s23, [#allocation3]  }
   0x8   :  { %s302_s1 = smov [#allocation7]  }
   0x9   :  { %s42_s27 = sshll.u32 %s302_s1, 4  ;;  %s43_s27 = int_to_ptr.vmem [resolvable:$true] %s42_s27 }
   0xa   :  { %45 = dma.hbm_to_vmem [thread:$0]  %s41_s26, 64, %s43_s27, [#allocation6]  }
   0xb   :  { %292 = dma.done.wait [#allocation3], 128  }
   0xc   :  { %293 = vsyncadd [#allocation3], 4294967168 }
   0xd   :  { %294 = dma.done.wait [#allocation6], 960  }
   0xe   :  { %295 = vsyncadd [#allocation6], 4294966336  ;;  %vm72_vm0 = vcmask 1043456   ;;  %v66_v0 = vld [vmem:[#allocation5 + $0x30] sm:$0xf]  ;;  %v65_v1 = vld [vmem:[#allocation5 + $0x28] sm:$0xff] }
   0xf   :  { %182 = vmatpush.msk.msra.mxu0 %vm72_vm0, %v66_v0  ;;  %v64_v2 = vld [vmem:[#allocation5 + $0x20] sm:$0xff]  ;;  %v63_v3 = vld [vmem:[#allocation5 + $0x18] sm:$0xff]  ;;  %v62_v4 = vld [vmem:[#allocation5 + $0x10] sm:$0xff]  ;;  %vm68_vm1 = vcmask 424960   ;;  %s303_s0 = smov [#allocation8]   ;;  %s171_s30 = sshll.u32 %s344_s3, 4  ;;  %s172_s30 = int_to_ptr.hbm [resolvable:$true] %s171_s30 }
  0x10   :  { %v61_v5 = vld [vmem:[#allocation5 + $0x8] sm:$0xff]  ;;  %v60_v6 = vld [vmem:[#allocation5] sm:$0xff]  ;;  %v59_v7 = vld [vmem:[#allocation2] sm:$0xff]  ;;  %s169_s2 = sshll.u32 %s303_s0, 4  ;;  %s170_s2 = int_to_ptr.vmem [resolvable:$true] %s169_s2 }
  0x11   :  { %86 = vmatpush.msra.mxu0 %v65_v1  ;;  %v333_v8 = vld [vmem:[#allocation7] sm:$0x7] }
  0x12   :  { %v67_v9 = vperm.slane %v333_v8, 0  ;;  %v159_v61 = vperm.slane %v333_v8, 1  ;;  %v161_v0 = vperm.slane %v333_v8, 2 }
  0x13   :  { %87 = vmatpush.msra.mxu0 %v64_v2 }
  0x15   :  { %88 = vmatpush.msra.mxu0 %v63_v3 }
  0x17   :  { %89 = vmatpush.msra.mxu0 %v62_v4 }
  0x19   :  { %90 = vmatpush.msra.mxu0 %v61_v5 }
  0x1b   :  { %91 = vmatpush.msra.mxu0 %v60_v6 }
  0x1c   :  { %183 = vmatmul.msk.f32.vlgmr.msra.gmra.mxu0 %vm68_vm1, %v59_v7 }
  0x99   :  { %v93_v10 = vpop.f32.mrf.mxu0 }
  0x9a   :  { %v94_v11 = vadd.f32 %v93_v10, %v67_v9 }
  0x9c   :  { %v97_v12 = vmul.f32 0.70710677, %v94_v11  ;;  %v96_v43 = vmul.f32 0.5, %v94_v11 }
  0x9e   :  { %v98_v13 = vand.u32 2147483647, %v97_v12  ;;  %vm131_vm6 = vcmp.ge.f32.partialorder %v97_v12, 0.0 }
  0xa0   :  { %v99_v14 = vmul.f32 0.3275911, %v98_v13  ;;  %v125_v25 = vsub.f32 0.0, %v98_v13 }
  0xa2   :  { %v100_v15 = vadd.f32 1.0, %v99_v14  ;;  %v126_v29 = vmul.f32 %v125_v25, %v98_v13 }
  0xa4   :  { %190 = vrcp.f32 %v100_v15  ;;  %v112_v19 = vand.u32 2147483648, %v100_v15  ;;  %v110_v21 = vand.u32 2147483647, %v100_v15  ;;  %vm106_vm3 = vweird.f32 %v100_v15 }
  0xa5   :  { %v127_v32 = vmul.f32 1.442695, %v126_v29 }
  0xa6   :  { %v113_v23 = vor.u32 1.1754944e-38, %v112_v19  ;;  %vm111_vm5 = vcmp.eq.f32.partialorder %v110_v21, 8.507059e+37 }
  0xa7   :  { %192 = vpow2.f32 %v127_v32 }
  0xaa   :  { %v191_v16 = vpop.eup %190 }
  0xab   :  { %v102_v17 = vmul.f32 %v191_v16, %v100_v15  ;;  %vm107_vm2 = vweird.f32 %v191_v16 }
  0xac   :  { %vm108_vm4 = vmor %vm106_vm3, %vm107_vm2 }
  0xad   :  { %v103_v18 = vsub.f32 1.0, %v102_v17  ;;  %v193_v38 = vpop.eup %192 }
  0xaf   :  { %v104_v20 = vmul.f32 %v191_v16, %v103_v18 }
  0xb1   :  { %v105_v22 = vadd.f32 %v191_v16, %v104_v20 }
  0xb3   :  { %v109_v24 = vsel %vm108_vm4, %v191_v16, %v105_v22 }
  0xb4   :  { %v114_v26 = vsel %vm111_vm5, %v113_v23, %v109_v24 }
  0xb5   :  { %v116_v27 = vmul.f32 1.0614054, %v114_v26 }
  0xb7   :  { %v117_v28 = vadd.f32 -1.4531521, %v116_v27 }
  0xb9   :  { %v118_v30 = vmul.f32 %v117_v28, %v114_v26 }
  0xbb   :  { %v119_v31 = vadd.f32 1.4214138, %v118_v30 }
  0xbd   :  { %v120_v33 = vmul.f32 %v119_v31, %v114_v26 }
  0xbf   :  { %v121_v34 = vadd.f32 -0.28449672, %v120_v33 }
  0xc1   :  { %v122_v35 = vmul.f32 %v121_v34, %v114_v26 }
  0xc3   :  { %v123_v36 = vadd.f32 0.2548296, %v122_v35 }
  0xc5   :  { %v124_v37 = vmul.f32 %v123_v36, %v114_v26 }
  0xc7   :  { %v129_v39 = vmul.f32 %v193_v38, %v124_v37 }
  0xc9   :  { %v130_v40 = vsub.f32 1.0, %v129_v39 }
  0xcb   :  { %v132_v41 = vsub.f32 0.0, %v130_v40 }
  0xcd   :  { %v133_v42 = vsel %vm131_vm6, %v130_v40, %v132_v41 }
  0xce   :  { %v134_v44 = vadd.f32 1.0, %v133_v42 }
  0xd0   :  { %v135_v45 = vmul.f32 %v134_v44, %v96_v43 }
  0xd2   :  { %136 = vadd.xlane.f32.xlu0 %v135_v45  ;;  %v138_v46 = vmul.f32 %v135_v45, %v135_v45 }
  0xda   :  { %139 = vadd.xlane.f32.xlu0 %v138_v46 }
 0x145   :  { %v137_v47 = vpop.xlane.xlu0 %136 }
 0x146   :  { %v141_v48 = vmul.f32 0.03125, %v137_v47 }
 0x148   :  { %v143_v50 = vmul.f32 %v141_v48, %v141_v48  ;;  %v146_v62 = vsub.f32 %v135_v45, %v141_v48 }
 0x14d   :  { %v140_v49 = vpop.xlane.xlu0 %139 }
 0x14e   :  { %v142_v51 = vmul.f32 0.03125, %v140_v49 }
 0x150   :  { %v144_v52 = vsub.f32 %v142_v51, %v143_v50 }
 0x152   :  { %v145_v53 = vmax.f32 %v144_v52, 0.0 }
 0x154   :  { %v147_v54 = vadd.f32 1e-05, %v145_v53 }
 0x156   :  { %194 = vrsqrt.f32 %v147_v54  ;;  %vm154_vm8 = vweird.f32 %v147_v54 }
 0x15c   :  { %v195_v55 = vpop.eup %194 }
 0x15d   :  { %v149_v56 = vmul.f32 %v195_v55, %v147_v54  ;;  %vm155_vm7 = vweird.f32 %v195_v55 }
 0x15e   :  { %vm156_vm9 = vmor %vm154_vm8, %vm155_vm7 }
 0x15f   :  { %v150_v57 = vmul.f32 %v195_v55, %v149_v56 }
 0x161   :  { %v151_v58 = vmul.f32 0.5, %v150_v57 }
 0x163   :  { %v152_v59 = vsub.f32 1.5, %v151_v58 }
 0x165   :  { %v153_v60 = vmul.f32 %v195_v55, %v152_v59 }
 0x167   :  { %v157_v63 = vsel %vm156_vm9, %v195_v55, %v153_v60 }
 0x168   :  { %v158_v1 = vmul.f32 %v157_v63, %v146_v62 }
 0x16a   :  { %v160_v2 = vmul.f32 %v159_v61, %v158_v1 }
 0x16c   :  { %v162_v3 = vadd.f32 %v161_v0, %v160_v2 }
 0x16e   :  { %163 = vst [vmem:[#allocation8] sm:$0xff] %v162_v3 }
 0x16f   :  { %174 = dma.vmem_to_hbm [thread:$0]  %s170_s2, 128, %s172_s30, [#allocation4]  }
 0x170   :  { %296 = dma.done.wait [#allocation4], 128  }
 0x171   :  { %297 = vsyncadd [#allocation4], 4294967168 }
 0x172   :  { %179 = vsyncpa [#allocation3], 1 }
 0x173   :  { %180 = vsyncpa [#allocation6], 1 }
 0x174   :  { %181 = vsyncpa [#allocation4], 1 }

</bundles_post_ra>
